<compile_context>
chip_gen: v6e
topology: v6e:2x2x1
jax: 0.10.0
libtpu: 0.0.40
codegen_flags: <defaults>
</compile_context>

<pallas_src>
import jax
import jax.numpy as jnp
from jax.experimental import pallas as pl
from jax.experimental.pallas import tpu as pltpu

_LANE = 128


def _round_up(x, m):
    return ((x + m - 1) // m) * m


def _sublane(dtype):
    # Minimum second-minor tile multiple for the compute dtype.
    return 16 if jnp.dtype(dtype) == jnp.dtype(jnp.bfloat16) else 8


def mlp_kernel(x_ref, w1_ref, b1_ref, w2_ref, b2_ref, o_ref):
    """One batch tile: x @ W1 + b1 -> ReLU -> @ W2 + b2 (MXU, f32 accumulation)."""
    h = jnp.dot(x_ref[...], w1_ref[...], preferred_element_type=jnp.float32)
    h = jnp.maximum(h + b1_ref[...], 0.0)                  # bias + ReLU in f32 (VPU)
    out = jnp.dot(h.astype(w2_ref.dtype), w2_ref[...],     # cast back to MXU dtype
                  preferred_element_type=jnp.float32)
    o_ref[...] = (out + b2_ref[...]).astype(o_ref.dtype)


def prepare_params(w1, b1, w2, b2, *, compute_dtype=jnp.float32):
    """One-time parameter prep (do at load time, NOT per forward call).

    - transpose PyTorch (out, in) Linear weights to (in, out) for x @ W
    - pad D_in only to the dtype sublane multiple (K need not be 128-wide)
    - pad hidden to a lane multiple (weights are resident, loaded once)
    - num_classes is left unpadded (output block last dim == full array dim)
    - cast weights to the MXU compute dtype (bf16 recommended on v5e/v6e/v7x);
      biases stay f32 (accumulation / bias / ReLU are all f32 in-kernel)
    """
    H, D_in = w1.shape
    C, _ = w2.shape
    sub = _sublane(compute_dtype)
    D_pad = _round_up(D_in, sub)      # sublane alignment only, not a lane multiple
    H_pad = _round_up(H, _LANE)       # hidden is the lane dim of the fc1 matmul

    w1_t = jnp.zeros((D_pad, H_pad), compute_dtype).at[:D_in, :H].set(
        jnp.transpose(w1).astype(compute_dtype))
    w2_t = jnp.zeros((H_pad, C), compute_dtype).at[:H, :].set(
        jnp.transpose(w2).astype(compute_dtype))
    b1_p = jnp.zeros((1, H_pad), jnp.float32).at[0, :H].set(b1.astype(jnp.float32))
    b2_p = b2.astype(jnp.float32).reshape(1, C)
    return dict(w1=w1_t, b1=b1_p, w2=w2_t, b2=b2_p,
                d_in=D_in, compute_dtype=compute_dtype)


def simple_mlp_forward(x, params, *, batch_tile=512):
    """x: (B, D_in) -> (B, num_classes). params from prepare_params()."""
    w1, b1, w2, b2 = params["w1"], params["b1"], params["w2"], params["b2"]
    compute_dtype = params["compute_dtype"]
    D_in = params["d_in"]

    B = x.shape[0]
    assert x.shape[1] == D_in
    D_pad, H_pad = w1.shape
    C = w2.shape[1]
    out_dtype = x.dtype

    # Batch tiling: TB a multiple of the dtype sublane (16 for bf16, 8 for f32).
    sub = _sublane(compute_dtype)
    B_ceil = _round_up(B, sub)
    TB = min(batch_tile, B_ceil)
    # v7x megacore: prefer >=2 batch tiles so the "parallel" axis shards across
    # both TensorCores (no-op for tiny batches; harmless on v5e/v6e).
    if TB == B_ceil and B_ceil >= 2 * sub:
        TB = _round_up(pl.cdiv(B_ceil, 2), sub)
    n_b = pl.cdiv(B, TB)
    B_pad = n_b * TB

    # Cast once; pad ONLY if the shapes actually need rounding (no full-array
    # zeros().at[].set() copy on the hot path).
    x_c = x.astype(compute_dtype)
    if B_pad != B or D_pad != D_in:
        x_c = jnp.pad(x_c, ((0, B_pad - B), (0, D_pad - D_in)))

    # Explicit VMEM budget: double-buffered streamed tiles (x, out), resident
    # weights/biases, f32 intermediate, plus margin.  Fits v7x's 64 MiB.
    itm = jnp.dtype(compute_dtype).itemsize
    oitm = jnp.dtype(out_dtype).itemsize
    block_bytes = (2 * TB * D_pad * itm                 # x tile (double buffered)
                   + 2 * TB * C * oitm                  # out tile (double buffered)
                   + 2 * (D_pad * H_pad + H_pad * C) * itm   # resident weights
                   + 2 * (H_pad + C) * 4                # resident biases (f32)
                   + TB * H_pad * 4)                    # f32 hidden intermediate
    vmem_limit = int(min(max(block_bytes + (4 << 20), 16 << 20), 64 << 20))

    # TODO(synk): on v7x, single-buffer the resident weight/bias BlockSpecs
    # (pipeline_mode=pl.Buffered(1)) and add a trailing "arbitrary" H-reduction
    # axis with a VMEM f32 accumulator once (W1+W2)*buffers stops fitting VMEM.
    out_pad = pl.pallas_call(
        mlp_kernel,
        out_shape=jax.ShapeDtypeStruct((B_pad, C), out_dtype),
        grid_spec=pltpu.PrefetchScalarGridSpec(
            num_scalar_prefetch=0,
            grid=(n_b,),
            in_specs=[
                pl.BlockSpec((TB, D_pad), lambda i: (i, 0)),     # x: tiled on batch
                pl.BlockSpec((D_pad, H_pad), lambda i: (0, 0)),  # W1: resident
                pl.BlockSpec((1, H_pad), lambda i: (0, 0)),      # b1: resident
                pl.BlockSpec((H_pad, C), lambda i: (0, 0)),      # W2: resident
                pl.BlockSpec((1, C), lambda i: (0, 0)),          # b2: resident
            ],
            out_specs=pl.BlockSpec((TB, C), lambda i: (i, 0)),   # last dim == full C
        ),
        compiler_params=pltpu.CompilerParams(
            dimension_semantics=("parallel",),       # batch tiles shard across TCs
            vmem_limit_bytes=vmem_limit),
    )(x_c, w1, b1, w2, b2)

    return out_pad[:B] if B_pad != B else out_pad


if __name__ == "__main__":
    # Small shapes consistent with the module: input_size=32, hidden=128, classes=16
    B, D_IN, HIDDEN, NUM_CLASSES = 8, 32, 128, 16

    key = jax.random.PRNGKey(0)
    kx, k1, k2, k3, k4 = jax.random.split(key, 5)

    x = jax.random.normal(kx, (B, D_IN), dtype=jnp.float32)

    bound1 = 1.0 / (D_IN ** 0.5)
    w1 = jax.random.uniform(k1, (HIDDEN, D_IN), minval=-bound1, maxval=bound1,
                            dtype=jnp.float32)
    b1 = jax.random.uniform(k2, (HIDDEN,), minval=-bound1, maxval=bound1,
                            dtype=jnp.float32)
    bound2 = 1.0 / (HIDDEN ** 0.5)
    w2 = jax.random.uniform(k3, (NUM_CLASSES, HIDDEN), minval=-bound2, maxval=bound2,
                            dtype=jnp.float32)
    b2 = jax.random.uniform(k4, (NUM_CLASSES,), minval=-bound2, maxval=bound2,
                            dtype=jnp.float32)

    ref = jnp.maximum(x @ w1.T + b1, 0.0) @ w2.T + b2

    # f32 MXU path (exact check)
    params_f32 = prepare_params(w1, b1, w2, b2, compute_dtype=jnp.float32)
    out_f32 = jax.block_until_ready(simple_mlp_forward(x, params_f32))
    assert out_f32.shape == (B, NUM_CLASSES)
    assert jnp.allclose(out_f32, ref, atol=1e-4, rtol=1e-4)

    # bf16 MXU inputs with f32 accumulation (recommended on v5e/v6e/v7x:
    # halves the x / weight HBM bytes; bias-add/ReLU stay f32 in-kernel)
    params_bf16 = prepare_params(w1, b1, w2, b2, compute_dtype=jnp.bfloat16)
    out_bf16 = jax.block_until_ready(simple_mlp_forward(x, params_bf16))
    assert out_bf16.shape == (B, NUM_CLASSES)
    assert jnp.allclose(out_bf16, ref, atol=1e-1, rtol=1e-1)

    print("KERNEL_OK")
</pallas_src>

<mosaic_0001>
module attributes {stable_mosaic.version = 11 : i64} {
  func.func @mlp_kernel(%arg0: i32, %arg1: memref<8x32xf32, #tpu.memory_space<vmem>>, %arg2: memref<32x128xf32, #tpu.memory_space<vmem>>, %arg3: memref<1x128xf32, #tpu.memory_space<vmem>>, %arg4: memref<128x16xf32, #tpu.memory_space<vmem>>, %arg5: memref<1x16xf32, #tpu.memory_space<vmem>>, %arg6: memref<8x16xf32, #tpu.memory_space<vmem>>) attributes {dimension_semantics = [#tpu.dimension_semantics<parallel>], iteration_bounds = array<i64: 1>, scalar_prefetch = 0 : i64, scratch_operands = 0 : i64, tpu.core_type = #tpu.core_type<tc>, window_params = [{transform_indices = @transform_0, window_bounds = array<i64: 8, 32>}, {pipeline_mode = #tpu.pipeline_mode<synchronous>, transform_indices = @transform_1, window_bounds = array<i64: 32, 128>}, {pipeline_mode = #tpu.pipeline_mode<synchronous>, transform_indices = @transform_2, window_bounds = array<i64: 1, 128>}, {pipeline_mode = #tpu.pipeline_mode<synchronous>, transform_indices = @transform_3, window_bounds = array<i64: 128, 16>}, {pipeline_mode = #tpu.pipeline_mode<synchronous>, transform_indices = @transform_4, window_bounds = array<i64: 1, 16>}, {transform_indices = @transform_5, window_bounds = array<i64: 8, 16>}]} {
    %c0 = arith.constant 0 : index
    %c0_0 = arith.constant 0 : index
    %0 = vector.load %arg1[%c0, %c0_0] : memref<8x32xf32, #tpu.memory_space<vmem>>, vector<8x32xf32>
    %c0_1 = arith.constant 0 : index
    %c0_2 = arith.constant 0 : index
    %1 = vector.load %arg2[%c0_1, %c0_2] : memref<32x128xf32, #tpu.memory_space<vmem>>, vector<32x128xf32>
    %cst = arith.constant dense<0.000000e+00> : vector<8x128xf32>
    %2 = tpu.matmul %0, %1, %cst {dimension_numbers = #tpu.dot_dimension_numbers<[1], [0], [0], [1], [0, 0, 1, 1], [], []>} : vector<8x32xf32>, vector<32x128xf32>, vector<8x128xf32> -> vector<8x128xf32>
    %c0_3 = arith.constant 0 : index
    %c0_4 = arith.constant 0 : index
    %3 = vector.load %arg3[%c0_3, %c0_4] : memref<1x128xf32, #tpu.memory_space<vmem>>, vector<1x128xf32>
    %4 = vector.broadcast %3 : vector<1x128xf32> to vector<8x128xf32>
    %5 = arith.addf %2, %4 : vector<8x128xf32>
    %cst_5 = arith.constant 0.000000e+00 : f32
    %6 = vector.broadcast %cst_5 : f32 to vector<8x128xf32>
    %7 = arith.maximumf %5, %6 : vector<8x128xf32>
    %c0_6 = arith.constant 0 : index
    %c0_7 = arith.constant 0 : index
    %8 = vector.load %arg4[%c0_6, %c0_7] : memref<128x16xf32, #tpu.memory_space<vmem>>, vector<128x16xf32>
    %cst_8 = arith.constant dense<0.000000e+00> : vector<8x16xf32>
    %9 = tpu.matmul %7, %8, %cst_8 {dimension_numbers = #tpu.dot_dimension_numbers<[1], [0], [0], [1], [0, 0, 1, 1], [], []>} : vector<8x128xf32>, vector<128x16xf32>, vector<8x16xf32> -> vector<8x16xf32>
    %c0_9 = arith.constant 0 : index
    %c0_10 = arith.constant 0 : index
    %10 = vector.load %arg5[%c0_9, %c0_10] : memref<1x16xf32, #tpu.memory_space<vmem>>, vector<1x16xf32>
    %11 = vector.broadcast %10 : vector<1x16xf32> to vector<8x16xf32>
    %12 = arith.addf %9, %11 : vector<8x16xf32>
    %c0_11 = arith.constant 0 : index
    %c0_12 = arith.constant 0 : index
    %13 = vector.load %arg6[%c0_11, %c0_12] : memref<8x16xf32, #tpu.memory_space<vmem>>, vector<8x16xf32>
    tpu.vector_store %arg6[%c0_11, %c0_12], %12 {strides = array<i32>} : memref<8x16xf32, #tpu.memory_space<vmem>>, vector<8x16xf32>,
    return
  }
  func.func @transform_0(%arg0: i32) -> (i32, i32) {
    %c0_i32 = arith.constant 0 : i32
    %c0_i32_0 = arith.constant 0 : i32
    return %arg0, %c0_i32 : i32, i32
  }
  func.func @transform_1(%arg0: i32) -> (i32, i32) {
    %c0_i32 = arith.constant 0 : i32
    %c0_i32_0 = arith.constant 0 : i32
    %c0_i32_1 = arith.constant 0 : i32
    return %c0_i32, %c0_i32_0 : i32, i32
  }
  func.func @transform_2(%arg0: i32) -> (i32, i32) {
    %c0_i32 = arith.constant 0 : i32
    %c0_i32_0 = arith.constant 0 : i32
    %c0_i32_1 = arith.constant 0 : i32
    return %c0_i32, %c0_i32_0 : i32, i32
  }
  func.func @transform_3(%arg0: i32) -> (i32, i32) {
    %c0_i32 = arith.constant 0 : i32
    %c0_i32_0 = arith.constant 0 : i32
    %c0_i32_1 = arith.constant 0 : i32
    return %c0_i32, %c0_i32_0 : i32, i32
  }
  func.func @transform_4(%arg0: i32) -> (i32, i32) {
    %c0_i32 = arith.constant 0 : i32
    %c0_i32_0 = arith.constant 0 : i32
    %c0_i32_1 = arith.constant 0 : i32
    return %c0_i32, %c0_i32_0 : i32, i32
  }
  func.func @transform_5(%arg0: i32) -> (i32, i32) {
    %c0_i32 = arith.constant 0 : i32
    %c0_i32_0 = arith.constant 0 : i32
    return %arg0, %c0_i32 : i32, i32
  }
}

</mosaic_0001>

<bundles_post_ra>
// kernel: tpu_custom_call.1
= control target key start
LH: loop header
LB: loop body
LE: loop exit
PB: predicated region body
PF: predicated region fallthrough
CT: control target
= control target key end

     0   :  { %v313_v1 = vmov 0.0   ;;  %vm314_vm0 = vmmov 0   ;;  %vm33_vm1 = vcmask 261120   ;;  %s442_s0 = inlined_call_operand.vmem [shape: f32[8,32], index: 0, kind: input, shape index: {}]   ;;  %s443_s1 = inlined_call_operand.vmem [shape: f32[32,128], index: 1, kind: input, shape index: {}]   ;;  %s444_s2 = inlined_call_operand.vmem [shape: f32[1,128], index: 2, kind: input, shape index: {}]   ;;  %s445_s3 = inlined_call_operand.vmem [shape: f32[128,16], index: 3, kind: input, shape index: {}]   ;;  %s446_s4 = inlined_call_operand.vmem [shape: f32[1,16], index: 4, kind: input, shape index: {}]   ;;  %s447_s5 = inlined_call_operand.hbm [shape: f32[8,16], index: 5, kind: output, shape index: {}]  }
   0x1   :  { %v25_v0 = vld [vmem:[%s443_s1 + $0x18] sm:$0xff]  ;;  %242 = vmatprep.subr.mxu0 %v313_v1  ;;  %v24_v2 = vld [vmem:[%s443_s1 + $0x10] sm:$0xff]  ;;  %250 = vmatprep.mubr.msk.f32.mxu0 %vm314_vm0, %v313_v1  ;;  %v23_v5 = vld [vmem:[%s443_s1 + $0x8] sm:$0xff] }
   0x2   :  { %v123_v3 = vld [vmem:[%s445_s3 + $0x78] sm:$0xff]  ;;  %243 = vmatpush3.msra.mxu0 %v25_v0  ;;  %253 = vmatprep.subr.mxu1 %v313_v1  ;;  %v122_v4 = vld [vmem:[%s445_s3 + $0x70] sm:$0xff]  ;;  %v121_v6 = vld [vmem:[%s445_s3 + $0x68] sm:$0xff] }
   0x3   :  { %244 = vmatprep.subr.mxu0 %v313_v1  ;;  %254 = vmatpush3.msra.mxu1 %v123_v3  ;;  %v22_v7 = vld [vmem:[%s443_s1] sm:$0xff] }
   0x4   :  { %245 = vmatpush3.msra.mxu0 %v24_v2  ;;  %255 = vmatprep.subr.mxu1 %v313_v1  ;;  %v21_v8 = vld [vmem:[%s442_s0] sm:$0xff] }
   0x5   :  { %246 = vmatprep.subr.mxu0 %v313_v1  ;;  %256 = vmatpush3.msra.mxu1 %v122_v4  ;;  %v120_v9 = vld [vmem:[%s445_s3 + $0x60] sm:$0xff] }
   0x6   :  { %247 = vmatpush3.msra.mxu0 %v23_v5  ;;  %257 = vmatprep.subr.mxu1 %v313_v1 }
   0x7   :  { %10 = vsyncpa [#allocation3], 0  ;;  %248 = vmatprep.subr.mxu0 %v313_v1  ;;  %258 = vmatpush3.msra.mxu1 %v121_v6  ;;  %v119_v10 = vld [vmem:[%s445_s3 + $0x58] sm:$0xff]  ;;  %v118_v11 = vld [vmem:[%s445_s3 + $0x50] sm:$0xff]  ;;  %s315_s11 = smov [#allocation2]   ;;  %vm201_vm2 = vcmask 130048  }
   0x8   :  { %249 = vmatpush3.msra.mxu0 %v22_v7  ;;  %259 = vmatprep.subr.mxu1 %v313_v1  ;;  %v117_v12 = vld [vmem:[%s445_s3 + $0x48] sm:$0xff]  ;;  %v116_v13 = vld [vmem:[%s445_s3 + $0x40] sm:$0xff]  ;;  %v115_v14 = vld [vmem:[%s445_s3 + $0x38] sm:$0xff]  ;;  %s209_s0 = sshll.u32 %s315_s11, 4  ;;  %s210_s0 = int_to_ptr.vmem [resolvable:$true] %s209_s0 }
   0x9   :  { %251 = vmatmul.mubr.msk.f32.vlgmr.msra.gmra.mxu0 %vm33_vm1, %v21_v8  ;;  %260 = vmatpush3.msra.mxu1 %v120_v9  ;;  %v114_v15 = vld [vmem:[%s445_s3 + $0x30] sm:$0xff]  ;;  %v113_v16 = vld [vmem:[%s445_s3 + $0x28] sm:$0xff]  ;;  %v112_v17 = vld [vmem:[%s445_s3 + $0x20] sm:$0xff]  ;;  %p296_p1 = scmp.lt.s32.totalorder %s210_s0, %s210_s0 }
   0xa   :  { %261 = vmatprep.subr.mxu1 %v313_v1  ;;  %285 = vmatprep.mubr.msk.f32.mxu1 %vm314_vm0, %v313_v1  ;;  %v111_v18 = vld [vmem:[%s445_s3 + $0x18] sm:$0xff]  ;;  %v110_v19 = vld [vmem:[%s445_s3 + $0x10] sm:$0xff]  ;;  %v109_v20 = vld [vmem:[%s445_s3 + $0x8] sm:$0xff] }
   0xb   :  { %262 = vmatpush3.msra.mxu1 %v119_v10  ;;  %v108_v21 = vld [vmem:[%s445_s3] sm:$0xff]  ;;  %s291_s3 = scalar_lea.vmem %s210_s0, 128 }
   0xc   :  { %263 = vmatprep.subr.mxu1 %v313_v1  ;;  %v217_v22 = vld [vmem:[%s444_s2] ss:$0 sm:$0xff]  ;;  %p292_p0 = scmp.ne.s32.totalorder %s210_s0, %s291_s3  ;;  %p297_p2 = scmp.lt.s32.totalorder %s291_s3, %s291_s3 }
   0xd   :  { %264 = vmatpush3.msra.mxu1 %v118_v11  ;;  %v219_v27 = vld [vmem:[%s446_s4] ss:$0 sm:$0xff] }
   0xe   :  { %265 = vmatprep.subr.mxu1 %v313_v1  ;;  %p298_p3 = por %p297_p2, %p296_p1 }
   0xf   :  { %266 = vmatpush3.msra.mxu1 %v117_v12 }
  0x10   :  { %267 = vmatprep.subr.mxu1 %v313_v1  ;;  %p299_p4 = pnand %p298_p3, %p292_p0 }
  0x11   :  { %268 = vmatpush3.msra.mxu1 %v116_v13 }
  0x12   :  { %269 = vmatprep.subr.mxu1 %v313_v1 }
  0x13   :  { %270 = vmatpush3.msra.mxu1 %v115_v14 }
  0x14   :  { %271 = vmatprep.subr.mxu1 %v313_v1 }
  0x15   :  { %272 = vmatpush3.msra.mxu1 %v114_v15 }
  0x16   :  { %273 = vmatprep.subr.mxu1 %v313_v1 }
  0x17   :  { %274 = vmatpush3.msra.mxu1 %v113_v16 }
  0x18   :  { %275 = vmatprep.subr.mxu1 %v313_v1 }
  0x19   :  { %276 = vmatpush3.msra.mxu1 %v112_v17 }
  0x1a   :  { %277 = vmatprep.subr.mxu1 %v313_v1 }
  0x1b   :  { %278 = vmatpush3.msra.mxu1 %v111_v18 }
  0x1c   :  { %279 = vmatprep.subr.mxu1 %v313_v1 }
  0x1d   :  { %280 = vmatpush3.msra.mxu1 %v110_v19 }
  0x1e   :  { %281 = vmatprep.subr.mxu1 %v313_v1 }
  0x1f   :  { %282 = vmatpush3.msra.mxu1 %v109_v20 }
  0x20   :  { %283 = vmatprep.subr.mxu1 %v313_v1 }
  0x21   :  { %284 = vmatpush3.msra.mxu1 %v108_v21 }
  0xc9   :  { %v103_v23 = vpop.f32.mrf.mxu0 }
  0xca   :  { %v104_v24 = vadd.f32 %v217_v22, %v103_v23 }
  0xcb   :  { %v252_v25 = vpop.f32.mrf.mxu0 }
  0xcc   :  { %v107_v26 = vmax.f32 %v104_v24, 0.0 }
  0xce   :  { %286 = vmatmul.mubr.f32.vlgmr.msra.gmra.mxu1 %v107_v26 }
 0x18e   :  { %v197_v28 = vpop.f32.mrf.mxu1 }
 0x18f   :  { %v198_v29 = vadd.f32 %v219_v27, %v197_v28 }
 0x190   :  { %v287_v30 = vpop.f32.mrf.mxu1 }
 0x191   :  { %202 = vst.msk [vmem:[#allocation2] sm:$0xff] %vm201_vm2, %v198_v29 }
 0x192   :  { %302 = shalt.err (!%p299_p4)
}
 0x193   :  { %212 = dma.vmem_to_hbm [thread:$0]  %s210_s0, 128, %s447_s5, [#allocation3]  }
 0x194   :  { %311 = dma.done.wait [#allocation3], 128  }
 0x195   :  { %312 = vsyncadd [#allocation3], 4294967168 }
 0x196   :  { %216 = vsyncpa [#allocation3], 1 }

</bundles_post_ra>
